<compile_context>
chip_gen: v5e
topology: v5e:2x2
jax: 0.10.0
libtpu: 0.0.40
codegen_flags: <defaults>
</compile_context>

<pallas_src>
import functools

import jax
import jax.numpy as jnp
from jax.experimental import pallas as pl
from jax.experimental.pallas import tpu as pltpu

NUM_STATES = 4     # env.observation_space.shape[0] for CartPole-v1
NUM_ACTIONS = 2    # env.action_space.n for CartPole-v1
H1 = 50
H2 = 30

_LANE = 128          # batch tile must be a multiple of the lane width
_TB_MAX = 16384      # max rows (lanes) per grid step; ~3 MiB of in/out buffers


def _round_up(x, m):
    return ((x + m - 1) // m) * m


def _cdiv(a, b):
    return -(-a // b)


@functools.lru_cache(maxsize=1)
def _min_parallel_steps():
    """>=2 grid steps on v7x (2 TensorCores/chip) so dimension_semantics
    ('parallel',) actually shards; 1 big tile on single-TC chips (v5e/v6e)."""
    try:
        kind = jax.devices()[0].device_kind.lower()
    except Exception:
        return 1
    return 2 if "v7" in kind else 1


def _choose_tile(batch, tb_max):
    """Balanced, 128-aligned batch tiling: (padded_batch, tile_rows)."""
    padded = _round_up(batch, _LANE)
    steps = max(_min_parallel_steps(), _cdiv(padded, tb_max))
    tb = min(tb_max, _round_up(_cdiv(padded, steps), _LANE))
    padded = _round_up(padded, tb)
    return padded, tb


def _net_kernel(x_ref, w1_ref, b1_ref, w2_ref, b2_ref, w3_ref, b3_ref, out_ref):
    # x tile: [NUM_STATES, TB] bf16 (batch on lanes); weights native [out, in].
    x = x_ref[...]                                                        # [4,  TB]
    h1 = jnp.dot(w1_ref[...], x, preferred_element_type=jnp.float32) + b1_ref[...]
    h1 = jnp.maximum(h1, 0.0).astype(jnp.bfloat16)                        # [50, TB]
    h2 = jnp.dot(w2_ref[...], h1, preferred_element_type=jnp.float32) + b2_ref[...]
    h2 = jnp.maximum(h2, 0.0).astype(jnp.bfloat16)                        # [30, TB]
    out = jnp.dot(w3_ref[...], h2, preferred_element_type=jnp.float32) + b3_ref[...]
    out_ref[...] = out                                                    # [2,  TB] f32


def prepare_params(params):
    """One-time packing (keep outside the hot path): bf16 weights in native
    [out, in] layout, f32 column-vector biases for lane broadcast."""
    return {
        "w1": params["fc1_w"].astype(jnp.bfloat16),                 # [50, 4]
        "b1": params["fc1_b"].reshape(H1, 1).astype(jnp.float32),   # [50, 1]
        "w2": params["fc2_w"].astype(jnp.bfloat16),                 # [30, 50]
        "b2": params["fc2_b"].reshape(H2, 1).astype(jnp.float32),   # [30, 1]
        "w3": params["out_w"].astype(jnp.bfloat16),                 # [2, 30]
        "b3": params["out_b"].reshape(NUM_ACTIONS, 1).astype(jnp.float32),
    }


def _net_forward_impl(x, prepared, *, tb_max=_TB_MAX):
    """x: [batch, NUM_STATES] float32. prepared: output of prepare_params()."""
    batch = x.shape[0]
    padded, tb = _choose_tile(batch, tb_max)

    # Batch -> lanes: [batch, 4] -> [4, padded] bf16, zero-padded columns.
    # Under jit this pad + cast + transpose fuses into a single small XLA fusion.
    x_t = jnp.pad(x.T.astype(jnp.bfloat16), ((0, 0), (0, padded - batch)))

    # Weights/biases are VMEM-resident across grid steps (constant block index).
    resident = lambda arr: pl.BlockSpec(arr.shape, lambda i: (0, 0))

    out_t = pl.pallas_call(
        _net_kernel,
        out_shape=jax.ShapeDtypeStruct((NUM_ACTIONS, padded), jnp.float32),
        grid=(padded // tb,),
        in_specs=[
            pl.BlockSpec((NUM_STATES, tb), lambda i: (0, i)),   # x: tiled over batch
            resident(prepared["w1"]), resident(prepared["b1"]),
            resident(prepared["w2"]), resident(prepared["b2"]),
            resident(prepared["w3"]), resident(prepared["b3"]),
        ],
        out_specs=pl.BlockSpec((NUM_ACTIONS, tb), lambda i: (0, i)),
        compiler_params=pltpu.CompilerParams(
            dimension_semantics=("parallel",),        # megacore sharding on v7x
            vmem_limit_bytes=32 * 1024 * 1024),       # headroom for big tiles (also lifts v5e's 16 MiB default)
    )(x_t, prepared["w1"], prepared["b1"], prepared["w2"], prepared["b2"],
      prepared["w3"], prepared["b3"])

    # Back to the PyTorch convention [batch, NUM_ACTIONS]; drop padded columns.
    # (Tiny [2, batch] slice+transpose; fuses under the same jit.)
    return out_t[:, :batch].T


net_forward = jax.jit(_net_forward_impl, static_argnames=("tb_max",))


def init_params(key):
    """weight ~ N(0, 0.1) as in the module; biases use PyTorch's default
    U(-1/sqrt(fan_in), 1/sqrt(fan_in))."""
    k1, k2, k3, k4, k5, k6 = jax.random.split(key, 6)
    b1 = 1.0 / jnp.sqrt(NUM_STATES)
    b2 = 1.0 / jnp.sqrt(H1)
    b3 = 1.0 / jnp.sqrt(H2)
    return {
        "fc1_w": 0.1 * jax.random.normal(k1, (H1, NUM_STATES), jnp.float32),
        "fc1_b": jax.random.uniform(k4, (H1,), jnp.float32, -b1, b1),
        "fc2_w": 0.1 * jax.random.normal(k2, (H2, H1), jnp.float32),
        "fc2_b": jax.random.uniform(k5, (H2,), jnp.float32, -b2, b2),
        "out_w": 0.1 * jax.random.normal(k3, (NUM_ACTIONS, H2), jnp.float32),
        "out_b": jax.random.uniform(k6, (NUM_ACTIONS,), jnp.float32, -b3, b3),
    }


def reference_forward(x, params):
    """Pure-JAX f32 reference mirroring the PyTorch forward."""
    h1 = jnp.maximum(x @ params["fc1_w"].T + params["fc1_b"], 0.0)
    h2 = jnp.maximum(h1 @ params["fc2_w"].T + params["fc2_b"], 0.0)
    return h2 @ params["out_w"].T + params["out_b"]


if __name__ == "__main__":
    key = jax.random.PRNGKey(0)
    pkey, xkey, xkey2 = jax.random.split(key, 3)

    params = init_params(pkey)
    prepared = prepare_params(params)

    # Small shape consistent with the module: a batch of CartPole states.
    batch = 8
    x = jax.random.normal(xkey, (batch, NUM_STATES), jnp.float32)

    out = jax.block_until_ready(net_forward(x, prepared))
    ref = reference_forward(x, params)
    assert out.shape == (batch, NUM_ACTIONS)
    # bf16 MXU operands + f32 accumulation => ~1e-3 abs error vs f32 reference.
    assert jnp.allclose(out, ref, atol=1e-2, rtol=1e-2), "Pallas output mismatch (small batch)"

    # Exercise the multi-step 'parallel' batch grid (force 4 tiles of 256).
    big_batch = 1024
    xb = jax.random.normal(xkey2, (big_batch, NUM_STATES), jnp.float32)
    outb = jax.block_until_ready(net_forward(xb, prepared, tb_max=256))
    refb = reference_forward(xb, params)
    assert outb.shape == (big_batch, NUM_ACTIONS)
    assert jnp.allclose(outb, refb, atol=1e-2, rtol=1e-2), "Pallas output mismatch (large batch)"

    # Default (large-tile) path on the bigger batch as well: single/dual tile.
    outb2 = jax.block_until_ready(net_forward(xb, prepared))
    assert jnp.allclose(outb2, refb, atol=1e-2, rtol=1e-2), "Pallas output mismatch (big tile)"

    print("KERNEL_OK")
</pallas_src>

<mosaic_0001>
module attributes {stable_mosaic.version = 11 : i64} {
  func.func @_net_kernel(%arg0: i32, %arg1: memref<4x128xbf16, #tpu.memory_space<vmem>>, %arg2: memref<50x4xbf16, #tpu.memory_space<vmem>>, %arg3: memref<50x1xf32, #tpu.memory_space<vmem>>, %arg4: memref<30x50xbf16, #tpu.memory_space<vmem>>, %arg5: memref<30x1xf32, #tpu.memory_space<vmem>>, %arg6: memref<2x30xbf16, #tpu.memory_space<vmem>>, %arg7: memref<2x1xf32, #tpu.memory_space<vmem>>, %arg8: memref<2x128xf32, #tpu.memory_space<vmem>>) attributes {dimension_semantics = [#tpu.dimension_semantics<parallel>], iteration_bounds = array<i64: 1>, scalar_prefetch = 0 : i64, scratch_operands = 0 : i64, tpu.core_type = #tpu.core_type<tc>, window_params = [{transform_indices = @transform_0, window_bounds = array<i64: 4, 128>}, {pipeline_mode = #tpu.pipeline_mode<synchronous>, transform_indices = @transform_1, window_bounds = array<i64: 50, 4>}, {pipeline_mode = #tpu.pipeline_mode<synchronous>, transform_indices = @transform_2, window_bounds = array<i64: 50, 1>}, {pipeline_mode = #tpu.pipeline_mode<synchronous>, transform_indices = @transform_3, window_bounds = array<i64: 30, 50>}, {pipeline_mode = #tpu.pipeline_mode<synchronous>, transform_indices = @transform_4, window_bounds = array<i64: 30, 1>}, {pipeline_mode = #tpu.pipeline_mode<synchronous>, transform_indices = @transform_5, window_bounds = array<i64: 2, 30>}, {pipeline_mode = #tpu.pipeline_mode<synchronous>, transform_indices = @transform_6, window_bounds = array<i64: 2, 1>}, {transform_indices = @transform_7, window_bounds = array<i64: 2, 128>}]} {
    %c0 = arith.constant 0 : index
    %c0_0 = arith.constant 0 : index
    %0 = vector.load %arg1[%c0, %c0_0] : memref<4x128xbf16, #tpu.memory_space<vmem>>, vector<4x128xbf16>
    %c0_1 = arith.constant 0 : index
    %c0_2 = arith.constant 0 : index
    %1 = vector.load %arg2[%c0_1, %c0_2] : memref<50x4xbf16, #tpu.memory_space<vmem>>, vector<50x4xbf16>
    %cst = arith.constant dense<0.000000e+00> : vector<50x128xf32>
    %2 = tpu.matmul %1, %0, %cst {dimension_numbers = #tpu.dot_dimension_numbers<[1], [0], [0], [1], [0, 0, 1, 1], [], []>} : vector<50x4xbf16>, vector<4x128xbf16>, vector<50x128xf32> -> vector<50x128xf32>
    %c0_3 = arith.constant 0 : index
    %c0_4 = arith.constant 0 : index
    %3 = vector.load %arg3[%c0_3, %c0_4] : memref<50x1xf32, #tpu.memory_space<vmem>>, vector<50x1xf32>
    %4 = vector.broadcast %3 : vector<50x1xf32> to vector<50x128xf32>
    %5 = arith.addf %2, %4 : vector<50x128xf32>
    %cst_5 = arith.constant 0.000000e+00 : f32
    %6 = vector.broadcast %cst_5 : f32 to vector<50x128xf32>
    %7 = arith.maximumf %5, %6 : vector<50x128xf32>
    %8 = arith.truncf %7 : vector<50x128xf32> to vector<50x128xbf16>
    %c0_6 = arith.constant 0 : index
    %c0_7 = arith.constant 0 : index
    %9 = vector.load %arg4[%c0_6, %c0_7] : memref<30x50xbf16, #tpu.memory_space<vmem>>, vector<30x50xbf16>
    %cst_8 = arith.constant dense<0.000000e+00> : vector<30x128xf32>
    %10 = tpu.matmul %9, %8, %cst_8 {dimension_numbers = #tpu.dot_dimension_numbers<[1], [0], [0], [1], [0, 0, 1, 1], [], []>} : vector<30x50xbf16>, vector<50x128xbf16>, vector<30x128xf32> -> vector<30x128xf32>
    %c0_9 = arith.constant 0 : index
    %c0_10 = arith.constant 0 : index
    %11 = vector.load %arg5[%c0_9, %c0_10] : memref<30x1xf32, #tpu.memory_space<vmem>>, vector<30x1xf32>
    %12 = vector.broadcast %11 : vector<30x1xf32> to vector<30x128xf32>
    %13 = arith.addf %10, %12 : vector<30x128xf32>
    %cst_11 = arith.constant 0.000000e+00 : f32
    %14 = vector.broadcast %cst_11 : f32 to vector<30x128xf32>
    %15 = arith.maximumf %13, %14 : vector<30x128xf32>
    %16 = arith.truncf %15 : vector<30x128xf32> to vector<30x128xbf16>
    %c0_12 = arith.constant 0 : index
    %c0_13 = arith.constant 0 : index
    %17 = vector.load %arg6[%c0_12, %c0_13] : memref<2x30xbf16, #tpu.memory_space<vmem>>, vector<2x30xbf16>
    %cst_14 = arith.constant dense<0.000000e+00> : vector<2x128xf32>
    %18 = tpu.matmul %17, %16, %cst_14 {dimension_numbers = #tpu.dot_dimension_numbers<[1], [0], [0], [1], [0, 0, 1, 1], [], []>} : vector<2x30xbf16>, vector<30x128xbf16>, vector<2x128xf32> -> vector<2x128xf32>
    %c0_15 = arith.constant 0 : index
    %c0_16 = arith.constant 0 : index
    %19 = vector.load %arg7[%c0_15, %c0_16] : memref<2x1xf32, #tpu.memory_space<vmem>>, vector<2x1xf32>
    %20 = vector.broadcast %19 : vector<2x1xf32> to vector<2x128xf32>
    %21 = arith.addf %18, %20 : vector<2x128xf32>
    %c0_17 = arith.constant 0 : index
    %c0_18 = arith.constant 0 : index
    %22 = vector.load %arg8[%c0_17, %c0_18] : memref<2x128xf32, #tpu.memory_space<vmem>>, vector<2x128xf32>
    tpu.vector_store %arg8[%c0_17, %c0_18], %21 {strides = array<i32>} : memref<2x128xf32, #tpu.memory_space<vmem>>, vector<2x128xf32>,
    return
  }
  func.func @transform_0(%arg0: i32) -> (i32, i32) {
    %c0_i32 = arith.constant 0 : i32
    %c0_i32_0 = arith.constant 0 : i32
    return %c0_i32, %arg0 : i32, i32
  }
  func.func @transform_1(%arg0: i32) -> (i32, i32) {
    %c0_i32 = arith.constant 0 : i32
    %c0_i32_0 = arith.constant 0 : i32
    %c0_i32_1 = arith.constant 0 : i32
    return %c0_i32, %c0_i32_0 : i32, i32
  }
  func.func @transform_2(%arg0: i32) -> (i32, i32) {
    %c0_i32 = arith.constant 0 : i32
    %c0_i32_0 = arith.constant 0 : i32
    %c0_i32_1 = arith.constant 0 : i32
    return %c0_i32, %c0_i32_0 : i32, i32
  }
  func.func @transform_3(%arg0: i32) -> (i32, i32) {
    %c0_i32 = arith.constant 0 : i32
    %c0_i32_0 = arith.constant 0 : i32
    %c0_i32_1 = arith.constant 0 : i32
    return %c0_i32, %c0_i32_0 : i32, i32
  }
  func.func @transform_4(%arg0: i32) -> (i32, i32) {
    %c0_i32 = arith.constant 0 : i32
    %c0_i32_0 = arith.constant 0 : i32
    %c0_i32_1 = arith.constant 0 : i32
    return %c0_i32, %c0_i32_0 : i32, i32
  }
  func.func @transform_5(%arg0: i32) -> (i32, i32) {
    %c0_i32 = arith.constant 0 : i32
    %c0_i32_0 = arith.constant 0 : i32
    %c0_i32_1 = arith.constant 0 : i32
    return %c0_i32, %c0_i32_0 : i32, i32
  }
  func.func @transform_6(%arg0: i32) -> (i32, i32) {
    %c0_i32 = arith.constant 0 : i32
    %c0_i32_0 = arith.constant 0 : i32
    %c0_i32_1 = arith.constant 0 : i32
    return %c0_i32, %c0_i32_0 : i32, i32
  }
  func.func @transform_7(%arg0: i32) -> (i32, i32) {
    %c0_i32 = arith.constant 0 : i32
    %c0_i32_0 = arith.constant 0 : i32
    return %c0_i32, %arg0 : i32, i32
  }
}

</mosaic_0001>

<bundles_post_ra>
// kernel: _net_forward_impl.1
= control target key start
LH: loop header
LB: loop body
LE: loop exit
PB: predicated region body
PF: predicated region fallthrough
CT: control target
= control target key end

     0   :  { %vm108_vm0 = vcmask 1041408   ;;  %v295_v2 = vmov 0   ;;  %vm95_vm1 = vcmask 31744   ;;  %vm196_vm2 = vcmask 1040384   ;;  %s406_s0 = inlined_call_operand.vmem [shape: bf16[4,128], index: 0, kind: input, shape index: {}]   ;;  %s407_s1 = inlined_call_operand.vmem [shape: bf16[50,4], index: 1, kind: input, shape index: {}]   ;;  %s408_s2 = inlined_call_operand.vmem [shape: f32[50,1], index: 2, kind: input, shape index: {}]   ;;  %s409_s4 = inlined_call_operand.vmem [shape: f32[30,1], index: 4, kind: input, shape index: {}]   ;;  %s410_s6 = inlined_call_operand.vmem [shape: f32[2,1], index: 6, kind: input, shape index: {}]   ;;  %s411_s3 = inlined_call_operand.vmem [shape: bf16[30,50], index: 3, kind: input, shape index: {}]   ;;  %s412_s5 = inlined_call_operand.vmem [shape: bf16[2,30], index: 5, kind: input, shape index: {}]   ;;  %s413_s7 = inlined_call_operand.vmem [shape: f32[2,128], index: 7, kind: output, shape index: {}]  }
   0x1   :  { %v27_v0 = vld [vmem:[%s406_s0] sm:$0x3]  ;;  %292 = vset.pattern.permute.xlu0 %v295_v2  ;;  %293 = vset.pattern.permute.xlu1 %v295_v2  ;;  %v287_v4 = vld [vmem:[%s407_s1 + $0x10] sm:$0xff]  ;;  %v40_v6 = vld [vmem:[%s408_s2 + $0x28] sm:$0xff]  ;;  %vm189_vm3 = vcmask 408576   ;;  %vm236_vm4 = vcmask 1046528  }
   0x2   :  { %v285_v1 = vld [vmem:[%s407_s1] sm:$0xff]  ;;  %v110_v3 = vsel %vm108_vm0, %v27_v0, 0  ;;  %v41_v5 = vld [vmem:[%s408_s2 + $0x30] sm:$0x3]  ;;  %294 = vset.pattern.permute.xlu2 %v295_v2  ;;  %69 = vperm.xlu1 %293, %v40_v6   ;;  %v38_v7 = vld [vmem:[%s408_s2 + $0x18] sm:$0xff]  ;;  %vm232_vm5 = vcmask 244736  }
   0x3   :  { %119 = vmatpush.bf16.msra.mxu0 %v110_v3  ;;  %290 = vmatpush.bf16.msra.mxu3 %v110_v3  ;;  %v39_v8 = vld [vmem:[%s408_s2 + $0x20] sm:$0xff]  ;;  %v37_v9 = vld [vmem:[%s408_s2 + $0x10] sm:$0xff]  ;;  %v34_v10 = vld [vmem:[%s407_s1 + $0x18] sm:$0x1] }
   0x4   :  { %74 = vperm.xlu0 %292, %v41_v5   ;;  %59 = vperm.xlu2 %294, %v38_v7   ;;  %v35_v11 = vld [vmem:[%s408_s2] sm:$0xff]  ;;  %v90_v12 = vunpack.c.l.b16 %v34_v10  ;;  %v36_v13 = vld [vmem:[%s408_s2 + $0x8] sm:$0xff]  ;;  %v157_v14 = vld [vmem:[%s409_s4 + $0x10] sm:$0xff] }
   0x5   :  { %v286_v15 = vld [vmem:[%s407_s1 + $0x8] sm:$0xff]  ;;  %v158_v17 = vld [vmem:[%s409_s4 + $0x18] sm:$0x3f]  ;;  %v155_v18 = vld [vmem:[%s409_s4] sm:$0xff] }
   0x6   :  { %270 = vmatmul.msk.bf16.vlgmr.msra.gmra.mxu0 %vm95_vm1, %v285_v1  ;;  %272 = vmatmul.msk.bf16.vlgmr.msra.gmra.mxu3 %vm95_vm1, %v287_v4  ;;  %v94_v16 = vpack.c.b16 %v90_v12, %v90_v12  ;;  %v156_v19 = vld [vmem:[%s409_s4 + $0x8] sm:$0xff]  ;;  %v226_v20 = vld [vmem:[%s410_s6] sm:$0x3] }
   0x7   :  { %v288_v55 = vld [vmem:[%s411_s3] sm:$0xff]  ;;  %v280_v56 = vld [vmem:[%s411_s3 + $0x8] sm:$0xf]  ;;  %v289_v57 = vld [vmem:[%s411_s3 + $0x8] sm:$0x70] }
   0x8   :  { %v281_v58 = vor.u32 %v289_v57, %v280_v56 }
   0xa   :  { %54 = vperm.xlu1 %293, %v37_v9  }
   0xc   :  { %64 = vperm.xlu0 %292, %v39_v8   ;;  %44 = vperm.xlu2 %294, %v35_v11  }
  0x12   :  { %171 = vperm.xlu1 %293, %v157_v14   ;;  %v225_v14 = vld [vmem:[%s412_s5] sm:$0x1] }
  0x14   :  { %49 = vperm.xlu0 %292, %v36_v13   ;;  %176 = vperm.xlu2 %294, %v158_v17  }
  0x16   :  { %271 = vmatmul.msk.bf16.gmra.mxu0 %vm95_vm1, %v286_v15  ;;  %273 = vmatmul.msk.bf16.gmra.mxu3 %vm95_vm1, %v94_v16 }
  0x1a   :  { %166 = vperm.xlu1 %293, %v156_v19  }
  0x1c   :  { %161 = vperm.xlu0 %292, %v155_v18   ;;  %229 = vperm.xlu2 %294, %v226_v20  }
  0x5e   :  { %v60_v28 = vpop.permute.xlu2 %59 }
  0x66   :  { %v45_v38 = vpop.permute.xlu2 %44 }
  0x6e   :  { %v177_v0 = vpop.permute.xlu2 %176 }
  0x74   :  { %v70_v27 = vpop.permute.xlu1 %69 }
  0x76   :  { %v75_v24 = vpop.permute.xlu0 %74  ;;  %v230_v15 = vpop.permute.xlu2 %229 }
  0x7c   :  { %v55_v36 = vpop.permute.xlu1 %54 }
  0x7e   :  { %v65_v29 = vpop.permute.xlu0 %64 }
  0x83   :  { %v121_v21 = vpop.f32.mrf.mxu0 }
  0x84   :  { %v122_v46 = vadd.f32 %v121_v21, %v45_v38  ;;  %v172_v61 = vpop.permute.xlu1 %171 }
  0x86   :  { %v50_v42 = vpop.permute.xlu0 %49  ;;  %v140_v51 = vmax.f32 %v122_v46, 0.0 }
  0x89   :  { %v131_v22 = vpop.f32.mrf.mxu3 }
  0x8a   :  { %v132_v35 = vadd.f32 %v131_v22, %v65_v29 }
  0x8b   :  { %v123_v23 = vpop.f32.mrf.mxu0 }
  0x8c   :  { %v144_v44 = vmax.f32 %v132_v35, 0.0  ;;  %v124_v47 = vadd.f32 %v123_v23, %v50_v42  ;;  %v167_v2 = vpop.permute.xlu1 %166 }
  0x8e   :  { %v141_v52 = vmax.f32 %v124_v47, 0.0  ;;  %v162_v5 = vpop.permute.xlu0 %161 }
  0x90   :  { %v147_v54 = vpack.c.bf16 %v141_v52, %v140_v51 }
  0x91   :  { %v133_v25 = vpop.f32.mrf.mxu3 }
  0x92   :  { %v134_v32 = vadd.f32 %v133_v25, %v70_v27 }
  0x93   :  { %v126_v26 = vpop.f32.mrf.mxu0 }
  0x94   :  { %v145_v39 = vmax.f32 %v134_v32, 0.0  ;;  %v127_v40 = vadd.f32 %v126_v26, %v55_v36 }
  0x96   :  { %v142_v48 = vmax.f32 %v127_v40, 0.0  ;;  %v149_v50 = vpack.c.bf16 %v145_v39, %v144_v44 }
  0x99   :  { %v136_v30 = vpop.f32.mrf.mxu3 }
  0x9a   :  { %v137_v31 = vadd.f32 %v136_v30, %v75_v24 }
  0x9b   :  { %v128_v34 = vpop.f32.mrf.mxu0 }
  0x9c   :  { %v146_v33 = vmax.f32 %v137_v31, 0.0  ;;  %v129_v41 = vadd.f32 %v128_v34, %v60_v28 }
  0x9e   :  { %v150_v37 = vpack.c.bf16 %v146_v33, %v146_v33  ;;  %v143_v49 = vmax.f32 %v129_v41, 0.0 }
  0xa0   :  { %v198_v43 = vsel %vm196_vm2, %v150_v37, 0  ;;  %v148_v53 = vpack.c.bf16 %v143_v49, %v142_v48 }
  0xa1   :  { %v138_v45 = vpop.f32.mrf.mxu3  ;;  %204 = vmatpush.bf16.msra.mxu1 %v198_v43 }
  0xa5   :  { %205 = vmatpush.bf16.msra.mxu1 %v149_v50 }
  0xa9   :  { %206 = vmatpush.bf16.msra.mxu1 %v148_v53 }
  0xad   :  { %207 = vmatpush.bf16.msra.mxu1 %v147_v54 }
  0xb0   :  { %282 = vmatmul.msk.bf16.vlgmr.msra.gmra.mxu1 %vm189_vm3, %v288_v55 }
  0xc0   :  { %283 = vmatmul.msk.bf16.gmra.mxu1 %vm189_vm3, %v281_v58 }
 0x12d   :  { %v209_v59 = vpop.f32.mrf.mxu1 }
 0x12e   :  { %v210_v8 = vadd.f32 %v209_v59, %v162_v5 }
 0x130   :  { %v219_v12 = vmax.f32 %v210_v8, 0.0 }
 0x135   :  { %v211_v60 = vpop.f32.mrf.mxu1 }
 0x136   :  { %v212_v4 = vadd.f32 %v211_v60, %v167_v2 }
 0x138   :  { %v220_v10 = vmax.f32 %v212_v4, 0.0 }
 0x13a   :  { %v223_v13 = vpack.c.bf16 %v220_v10, %v219_v12 }
 0x13d   :  { %v214_v62 = vpop.f32.mrf.mxu1 }
 0x13e   :  { %v215_v63 = vadd.f32 %v214_v62, %v172_v61 }
 0x140   :  { %v221_v6 = vmax.f32 %v215_v63, 0.0 }
 0x145   :  { %v216_v1 = vpop.f32.mrf.mxu1 }
 0x146   :  { %v217_v3 = vadd.f32 %v216_v1, %v177_v0 }
 0x148   :  { %v222_v7 = vmax.f32 %v217_v3, 0.0 }
 0x14a   :  { %v224_v9 = vpack.c.bf16 %v222_v7, %v221_v6 }
 0x14c   :  { %v238_v11 = vsel %vm236_vm4, %v224_v9, 0 }
 0x14d   :  { %246 = vmatpush.bf16.msra.mxu2 %v238_v11 }
 0x151   :  { %247 = vmatpush.bf16.msra.mxu2 %v223_v13 }
 0x154   :  { %284 = vmatmul.msk.bf16.vlgmr.msra.gmra.mxu2 %vm232_vm5, %v225_v14 }
 0x1d7   :  { %v249_v16 = vpop.f32.mrf.mxu2 }
 0x1d8   :  { %v250_v17 = vadd.f32 %v249_v16, %v230_v15 }
 0x1da   :  { %253 = vst [vmem:[%s413_s7] sm:$0x3] %v250_v17 }
 0x1df   :  { %v251_v18 = vpop.f32.mrf.mxu2 }

</bundles_post_ra>
